<compile_context>
chip_gen: v5e
topology: v5e:2x2
jax: 0.10.0
libtpu: 0.0.40
codegen_flags: <defaults>
</compile_context>

<pallas_src>
import jax
import jax.numpy as jnp
from jax.experimental import pallas as pl
from jax.experimental.pallas import tpu as pltpu


def _round_up(v, m):
    return (v + m - 1) // m * m


def _pick_tb(B, N, Kp, Ep, budget_bytes=6 * 1024 * 1024):
    """Pick how many batch elements to block per grid step.

    Working set per batch element (double-buffered in + out); keep it a few MiB
    so we stay well under the 32 MiB default scoped VMEM (and v7x's 64 MiB
    physical). Prefer a grid extent >= 2 so the 'parallel' batch axis can be
    sharded across v7x's two TensorCores.
    """
    per_b = 2 * (N * Kp * 2 + N * Ep * 4)  # bf16 patches + f32 out, x2 buffers
    max_tb = max(1, budget_bytes // max(per_b, 1))
    divs = [d for d in range(1, B + 1) if B % d == 0 and d <= max_tb]
    tb = max(divs) if divs else 1
    if B >= 2 and B // tb < 2:
        smaller = [d for d in divs if B // d >= 2]
        if smaller:
            tb = max(smaller)
    return tb


def _patch_proj_kernel(patches_ref, w_ref, bias_pos_ref, out_ref):
    # patches_ref: (TB, N, Kp)  bf16  flattened patches (zero-padded K)
    # w_ref:       (Kp, Ep)     bf16  conv weight as a projection matrix (padded)
    # bias_pos_ref:(N, Ep)      f32   conv_bias + pos_emb[1:], E-padded
    # out_ref:     (TB, N, Ep)  f32   patch-embedding rows (cls row handled in wrapper)
    tb, n, kp = patches_ref.shape
    ep = out_ref.shape[-1]

    # One big MXU matmul for all TB*N patch rows (reshape is tile-sequence
    # reinterpretation when N % 8 == 0 and Kp % 128 == 0 -> free).
    lhs = patches_ref[...].reshape(tb * n, kp)                       # bf16
    proj = jnp.dot(lhs, w_ref[...], preferred_element_type=jnp.float32)  # (TB*N, Ep) f32
    proj = proj.reshape(tb, n, ep)

    # f32 elementwise add (bias + positional embeddings), lane-dense aligned store.
    out_ref[...] = proj + bias_pos_ref[...]


def embeddings_forward(x, conv_w, conv_b, cls_token, pos_emb, patch_size):
    """x: (B, C, H, W). conv_w: (E, C, P, P). conv_b: (E,).
    cls_token: (1, 1, E). pos_emb: (1, N+1, E). Returns (B, N+1, E) float32."""
    B, C, H, W = x.shape
    E = conv_w.shape[0]
    P = patch_size
    Hp, Wp = H // P, W // P
    N = Hp * Wp
    K = C * P * P
    Kp = _round_up(K, 128)   # lane-aligned contraction dim
    Ep = _round_up(E, 128)   # lane-dense output dim

    # --- glue: patch extraction (pure layout), matches Conv2d(k=P, stride=P).
    # Cast to bf16 first so the materialized patch slab costs half the HBM bytes.
    xb = x.astype(jnp.bfloat16)
    patches = xb.reshape(B, C, Hp, P, Wp, P)
    patches = patches.transpose(0, 2, 4, 1, 3, 5)        # (B, Hp, Wp, C, P, P)
    patches = patches.reshape(B, N, K)
    if Kp != K:
        patches = jnp.pad(patches, ((0, 0), (0, 0), (0, Kp - K)))

    # Weight as (K, E) projection matrix, zero-padded to (Kp, Ep), bf16 for the MXU.
    w_mat = conv_w.reshape(E, K).T.astype(jnp.bfloat16)
    if (Kp, Ep) != (K, E):
        w_mat = jnp.pad(w_mat, ((0, Kp - K), (0, Ep - E)))

    # Fold conv bias + pos_emb rows 1..N into one f32 add term (E-padded).
    bias_pos = (pos_emb[0, 1:, :] + conv_b[None, :]).astype(jnp.float32)   # (N, E)
    if Ep != E:
        bias_pos = jnp.pad(bias_pos, ((0, 0), (0, Ep - E)))

    TB = _pick_tb(B, N, Kp, Ep)
    grid = (B // TB,)

    patch_out = pl.pallas_call(
        _patch_proj_kernel,
        out_shape=jax.ShapeDtypeStruct((B, N, Ep), jnp.float32),
        grid_spec=pltpu.PrefetchScalarGridSpec(
            num_scalar_prefetch=0,
            grid=grid,
            in_specs=[
                pl.BlockSpec((TB, N, Kp), lambda i: (i, 0, 0)),   # patches (bf16)
                pl.BlockSpec((Kp, Ep), lambda i: (0, 0)),         # weight (bf16)
                pl.BlockSpec((N, Ep), lambda i: (0, 0)),          # bias + pos[1:] (f32)
            ],
            out_specs=pl.BlockSpec((TB, N, Ep), lambda i: (i, 0, 0)),
        ),
        compiler_params=pltpu.CompilerParams(
            dimension_semantics=("parallel",)),
    )(patches, w_mat, bias_pos)

    # Slice off the E padding (no-op when E is already a multiple of 128).
    patch_rows = patch_out[:, :, :E] if Ep != E else patch_out

    # cls row = cls_token + pos_emb[0]; tiny (1, E) add, prepended in the wrapper
    # to keep the kernel's output slab 0-aligned and lane-dense.
    cls_row = (cls_token.reshape(1, 1, E) + pos_emb[:, :1, :]).astype(jnp.float32)
    out = jnp.concatenate(
        [jnp.broadcast_to(cls_row, (B, 1, E)), patch_rows], axis=1)
    return out


if __name__ == "__main__":
    # Small shapes consistent with the module (scaled down from ViT defaults):
    # in_channels=4, patch_size=4, emb_size=32, img_size=16 -> 16 patches, seq=17.
    B, C, IMG, P, E = 2, 4, 16, 4, 32
    N = (IMG // P) ** 2

    key = jax.random.PRNGKey(0)
    kx, kw, kb, kc, kp = jax.random.split(key, 5)

    x = jax.random.normal(kx, (B, C, IMG, IMG), dtype=jnp.float32)
    conv_w = jax.random.normal(kw, (E, C, P, P), dtype=jnp.float32) * 0.02
    conv_b = jax.random.normal(kb, (E,), dtype=jnp.float32) * 0.02
    # Module initializes these to zeros; use small random values so the add is exercised.
    cls_token = jax.random.normal(kc, (1, 1, E), dtype=jnp.float32) * 0.02
    pos_emb = jax.random.normal(kp, (1, N + 1, E), dtype=jnp.float32) * 0.02

    out = embeddings_forward(x, conv_w, conv_b, cls_token, pos_emb, P)
    out = jax.block_until_ready(out)

    # Reference check with plain JAX (same bf16 matmul operands, f32 accumulation).
    patches_ref = x.astype(jnp.bfloat16).reshape(
        B, C, IMG // P, P, IMG // P, P).transpose(0, 2, 4, 1, 3, 5).reshape(B, N, C * P * P)
    w_ref = conv_w.reshape(E, -1).astype(jnp.bfloat16)
    proj_ref = jnp.einsum(
        "bnk,ek->bne", patches_ref.astype(jnp.float32), w_ref.astype(jnp.float32)) + conv_b
    cls_rep = jnp.broadcast_to(cls_token, (B, 1, E))
    ref = jnp.concatenate([cls_rep, proj_ref], axis=1) + pos_emb

    assert out.shape == (B, N + 1, E)
    assert jnp.allclose(out, ref, atol=1e-2, rtol=1e-2), float(jnp.max(jnp.abs(out - ref)))
    print("KERNEL_OK")
</pallas_src>

<mosaic_0001>
module attributes {stable_mosaic.version = 11 : i64} {
  func.func @_patch_proj_kernel(%arg0: i32, %arg1: memref<1x16x128xbf16, #tpu.memory_space<vmem>>, %arg2: memref<128x128xbf16, #tpu.memory_space<vmem>>, %arg3: memref<16x128xf32, #tpu.memory_space<vmem>>, %arg4: memref<1x16x128xf32, #tpu.memory_space<vmem>>) attributes {dimension_semantics = [#tpu.dimension_semantics<parallel>], iteration_bounds = array<i64: 2>, scalar_prefetch = 0 : i64, scratch_operands = 0 : i64, tpu.core_type = #tpu.core_type<tc>, window_params = [{transform_indices = @transform_0, window_bounds = array<i64: 1, 16, 128>}, {pipeline_mode = #tpu.pipeline_mode<synchronous>, transform_indices = @transform_1, window_bounds = array<i64: 128, 128>}, {pipeline_mode = #tpu.pipeline_mode<synchronous>, transform_indices = @transform_2, window_bounds = array<i64: 16, 128>}, {transform_indices = @transform_3, window_bounds = array<i64: 1, 16, 128>}]} {
    %c0 = arith.constant 0 : index
    %c0_0 = arith.constant 0 : index
    %c0_1 = arith.constant 0 : index
    %0 = vector.load %arg1[%c0, %c0_0, %c0_1] : memref<1x16x128xbf16, #tpu.memory_space<vmem>>, vector<1x16x128xbf16>
    %1 = vector.shape_cast %0 : vector<1x16x128xbf16> to vector<16x128xbf16>
    %c0_2 = arith.constant 0 : index
    %c0_3 = arith.constant 0 : index
    %2 = vector.load %arg2[%c0_2, %c0_3] : memref<128x128xbf16, #tpu.memory_space<vmem>>, vector<128x128xbf16>
    %cst = arith.constant dense<0.000000e+00> : vector<16x128xf32>
    %3 = tpu.matmul %1, %2, %cst {dimension_numbers = #tpu.dot_dimension_numbers<[1], [0], [0], [1], [0, 0, 1, 1], [], []>} : vector<16x128xbf16>, vector<128x128xbf16>, vector<16x128xf32> -> vector<16x128xf32>
    %4 = vector.shape_cast %3 : vector<16x128xf32> to vector<1x16x128xf32>
    %c0_4 = arith.constant 0 : index
    %c0_5 = arith.constant 0 : index
    %5 = vector.load %arg3[%c0_4, %c0_5] : memref<16x128xf32, #tpu.memory_space<vmem>>, vector<16x128xf32>
    %6 = vector.shape_cast %5 : vector<16x128xf32> to vector<1x16x128xf32>
    %7 = arith.addf %4, %6 : vector<1x16x128xf32>
    %c0_6 = arith.constant 0 : index
    %c0_7 = arith.constant 0 : index
    %c0_8 = arith.constant 0 : index
    %8 = vector.load %arg4[%c0_6, %c0_7, %c0_8] : memref<1x16x128xf32, #tpu.memory_space<vmem>>, vector<1x16x128xf32>
    tpu.vector_store %arg4[%c0_6, %c0_7, %c0_8], %7 {strides = array<i32>} : memref<1x16x128xf32, #tpu.memory_space<vmem>>, vector<1x16x128xf32>,
    return
  }
  func.func @transform_0(%arg0: i32) -> (i32, i32, i32) {
    %c0_i32 = arith.constant 0 : i32
    %c0_i32_0 = arith.constant 0 : i32
    %c0_i32_1 = arith.constant 0 : i32
    return %arg0, %c0_i32, %c0_i32_0 : i32, i32, i32
  }
  func.func @transform_1(%arg0: i32) -> (i32, i32) {
    %c0_i32 = arith.constant 0 : i32
    %c0_i32_0 = arith.constant 0 : i32
    %c0_i32_1 = arith.constant 0 : i32
    return %c0_i32, %c0_i32_0 : i32, i32
  }
  func.func @transform_2(%arg0: i32) -> (i32, i32) {
    %c0_i32 = arith.constant 0 : i32
    %c0_i32_0 = arith.constant 0 : i32
    %c0_i32_1 = arith.constant 0 : i32
    return %c0_i32, %c0_i32_0 : i32, i32
  }
  func.func @transform_3(%arg0: i32) -> (i32, i32, i32) {
    %c0_i32 = arith.constant 0 : i32
    %c0_i32_0 = arith.constant 0 : i32
    %c0_i32_1 = arith.constant 0 : i32
    return %arg0, %c0_i32, %c0_i32_0 : i32, i32, i32
  }
}

</mosaic_0001>

<bundles_post_ra>
// kernel: tpu_custom_call.1
= control target key start
LH: loop header
LB: loop body
LE: loop exit
PB: predicated region body
PF: predicated region fallthrough
CT: control target
= control target key end

     0   :  { %8 = vsyncpa [#allocation3], 0  ;;  %s900_s0 = inlined_call_operand.hbm [shape: bf16[2,16,128], index: 0, kind: input, shape index: {}]   ;;  %s901_s1 = inlined_call_operand.hbm [shape: bf16[128,128], index: 1, kind: input, shape index: {}]   ;;  %s902_s2 = inlined_call_operand.hbm [shape: f32[16,128], index: 2, kind: input, shape index: {}]   ;;  %s903_s3 = inlined_call_operand.hbm [shape: f32[2,16,128], index: 3, kind: output, shape index: {}]  }
   0x1   :  { %10 = vsyncpa [#allocation3 + $0x1], 0 }
   0x2   :  { %11 = vsyncpa [#allocation6], 0 }
   0x3   :  { %12 = vsyncpa [#allocation4], 0 }
   0x4   :  { %14 = vsyncpa [#allocation4 + $0x1], 0  ;;  %s752_s12 = smov 0   ;;  %s754_s13 = smov 0  }
   0x5   :  { %s756_s14 = smov 0   ;;  %s758_s15 = smov 0  }
   0x6 LB: > { %s773_s16 = sadd.s32 4294967295, %s722_s15   ;;  %s424_s17 = sadd.s32 4294967294, %s722_s15   ;;  %s722_s15 = sphi %s758_s15, %s913_s15   ;;  %s718_s14 = sphi %s756_s14, %s912_s14   ;;  %s714_s13 = sphi %s754_s13, %s911_s13   ;;  %s710_s12 = sphi %s752_s12, %s910_s12  }
   0x7   : > { %p40_p0 = scmp.ne.s32.totalorder %s714_s13, %s710_s12  ;;  %p41_p1 = scmp.eq.s32.totalorder %s773_s16, 0 }
   0x8   : > { %p106_p2 = scmp.eq.s32.totalorder %s773_s16, 1  ;;  %p112_p3 = scmp.eq.s32.totalorder %s424_s17, 1 }
   0x9   : > { %p782_p4 = por %p41_p1, %p40_p0  ;;  %p425_p5 = scmp.ge.s32.totalorder %s722_s15, 1 }
   0xa   : > { %p787_p6 = por %p112_p3, %p40_p0  ;;  %p119_p7 = scmp.lt.s32.totalorder %s722_s15, 3 }
   0xb   : > { %s130_s22 = sshll.u32 %s901_s1, 4  ;;  %s724_s24 = smov [#allocation5]   ;;  %s131_s22 = int_to_ptr.hbm [resolvable:$true] %s130_s22 }
   0xc   : > { %p795_p8 = pnand %p425_p5, %p119_p7  ;;  %s132_s25 = sshll.u32 %s724_s24, 4  ;;  %s133_s25 = int_to_ptr.vmem [resolvable:$true] %s132_s25 }
   0xd   : > { %s144_s28 = sshll.u32 %s902_s2, 4  ;;  %s725_s29 = smov 64   ;;  %s145_s28 = int_to_ptr.hbm [resolvable:$true] %s144_s28 }
   0xe   : > { %p501_p9 = pneg %p795_p8  ;;  %s726_s30 = smov 4  }
   0xf   : > { %s727_s4 = smov [#allocation7]   ;;  %s728_s6 = smov 128  }
  0x10   : > { %p502_p10 = pnand %p501_p9, %p41_p1  ;;  %s146_s5 = sshll.u32 %s727_s4, 4  ;;  %s147_s5 = int_to_ptr.vmem [resolvable:$true] %s146_s5 }
  0x11   : > { %s729_s7 = smov 8   ;;  %s811_s8 = sadd.s32 1, %s722_s15  }
  0x12   : > { %504 = dma.hbm_to_vmem [thread:$0]  (!%p502_p10), %s131_s22, 1024, %s133_s25, [#allocation6], %s725_s29, %s725_s29, %s726_s30  }
  0x13   : > { %507 = dma.hbm_to_vmem [thread:$0]  (!%p502_p10), %s145_s28, 256, %s147_s5, [#allocation6], %s728_s6, %s728_s6, %s729_s7  }
  0x14   : > { %s24_s9 = ssub.s32 %s722_s15, %s811_s8  ;;  %s27_s10 = sadd.s32 1, %s718_s14 }
  0x15   : > { %p25_p12 = scmp.eq.s32.totalorder %s24_s9, 0  ;;  %p34_p13 = scmp.ne.s32.totalorder %s718_s14, %s714_s13 }
  0x16   : > { %p35_p0 = scmp.eq.s32.totalorder %s722_s15, 0  ;;  %p518_p7 = scmp.lt.s32.totalorder %s722_s15, 2 }
  0x17   : > { %s820_s11 = scalar_select %p25_p12, %s718_s14, %s27_s10  }
  0x18   : > { %p36_p3 = por %p35_p0, %p34_p13  ;;  %p824_p5 = por %p106_p2, %p34_p13 }
  0x19   : > { %s160_s20 = sand.u32 1, %s718_s14   ;;  %s478_s22 = sshll.u32 %s722_s15, 3 }
  0x1a   : > { %s429_s21 = sshll.u32 %s160_s20, 3  ;;  %s169_s26 = scalar_lea.hbm %s900_s0, %s478_s22 }
  0x1b   : > { %s164_s27 = scalar_lea.vmem [#allocation2], %s429_s21  ;;  %s170_s4 = sshll.u32 %s169_s26, 4  ;;  %s171_s4 = int_to_ptr.hbm [resolvable:$true] %s170_s4 }
  0x1c   : > { %s172_s28 = sshll.u32 %s164_s27, 4  ;;  %p834_p9 = pnand %p518_p7, %p36_p3  ;;  %s173_s28 = int_to_ptr.vmem [resolvable:$true] %s172_s28 }
  0x1d   : > { %s161_s6 = scalar_lea.sflag [#allocation3], %s160_s20  ;;  %s622_s7 = sshra.s32 %s171_s4, 4  ;;  %s623_s7 = int_to_ptr.hbm [resolvable:$true] %s622_s7 }
  0x1e   : > { %s624_s9 = scalar_lea.hbm %s623_s7, 8  ;;  %p626_p10 = pneg %p834_p9 }
  0x1f   : > { %p625_p2 = scmp.ne.s32.totalorder %s623_s7, %s624_s9  ;;  %s629_s22 = scalar_lea.hbm %s900_s0, 16 }
  0x20   : > { %p630_p0 = scmp.lt.s32.totalorder %s623_s7, %s900_s0  ;;  %p631_p3 = scmp.lt.s32.totalorder %s629_s22, %s624_s9 }
  0x21   : > { %p627_p12 = pnand %p626_p10, %p625_p2 }
  0x22   : > { %p632_p7 = por %p631_p3, %p630_p0 }
  0x23   : > { %p628_p13 = pneg %p627_p12 }
  0x25   : > { %p633_p11 = pnand %p632_p7, %p628_p13 }
  0x27   : > { %636 = shalt.err (!%p633_p11)
}
  0x28   : > { %511 = dma.hbm_to_vmem [thread:$0]  (!%p834_p9), %s171_s4, 128, %s173_s28, %s161_s6, %s725_s29, %s725_s29, %s726_s30  }
  0x29   : > { %184 = sbr.rel (%p795_p8) target bundleno = 221 (0xdd), region = 32  ;;  %s854_s20 = sand.u32 (!%p795_p8), 1, %s714_s13  }
  0x2a   : > { %s433_s26 = sshll.u32 (!%p795_p8), %s854_s20, 3  ;;  %s187_s27 = scalar_lea.sflag (!%p795_p8), [#allocation3], %s854_s20 }
  0x2b   : > { %s190_s7 = scalar_lea.vmem (!%p795_p8), [#allocation2], %s433_s26 }
  0x2e   : > { %697 = dma.done.wait (%p782_p4), %s187_s27, 128  }
  0x2f   : > { %699 = vsyncadd (%p782_p4), %s187_s27, 4294967168 }
  0x30   : > { %701 = dma.done.wait (%p41_p1), [#allocation6], 1280  }
  0x31   : > { %703 = vsyncadd (%p41_p1), [#allocation6], 4294966016  ;;  %v487_v0 = vld [vmem:[#allocation5 + $0x38] sm:$0xff]  ;;  %v486_v1 = vld [vmem:[#allocation5 + $0x30] sm:$0xff]  ;;  %s436_s18 = sshll.u32 %s854_s20, 4  ;;  %s488_s23 = sshll.u32 %s773_s16, 4 }
  0x32   : > { %296 = vmatpush.bf16.msra.mxu0 %v487_v0  ;;  %v485_v2 = vld [vmem:[#allocation5 + $0x28] sm:$0xff]  ;;  %v484_v3 = vld [vmem:[#allocation5 + $0x20] sm:$0xff]  ;;  %v483_v4 = vld [vmem:[#allocation5 + $0x18] sm:$0xff]  ;;  %s328_s28 = scalar_lea.hbm %s903_s3, %s488_s23  ;;  %s223_s4 = scalar_lea.vmem [#allocation8], %s436_s18 }
  0x33   : > { %v482_v5 = vld [vmem:[#allocation5 + $0x10] sm:$0xff]  ;;  %v481_v6 = vld [vmem:[#allocation5 + $0x8] sm:$0xff]  ;;  %v480_v7 = vld [vmem:[#allocation5] sm:$0xff]  ;;  %s329_s5 = sshll.u32 %s223_s4, 4  ;;  %s331_s6 = sshll.u32 %s328_s28, 4  ;;  %s330_s5 = int_to_ptr.vmem [resolvable:$true] %s329_s5  ;;  %s332_s6 = int_to_ptr.hbm [resolvable:$true] %s331_s6 }
  0x34   : > { %v479_v8 = vld [vmem:[%s190_s7] sm:$0xff]  ;;  %v310_v9 = vld [vmem:[#allocation7] sm:$0xff]  ;;  %v311_v12 = vld [vmem:[#allocation7 + $0x8] sm:$0xff]  ;;  %s317_s9 = scalar_lea.sflag [#allocation4], %s854_s20  ;;  %s666_s10 = sshra.s32 %s332_s6, 4  ;;  %s667_s10 = int_to_ptr.hbm [resolvable:$true] %s666_s10 }
  0x35   : > { %s668_s16 = scalar_lea.hbm %s667_s10, 16  ;;  %s672_s24 = scalar_lea.hbm %s903_s3, 32 }
  0x36   : > { %297 = vmatpush.bf16.msra.mxu0 %v486_v1  ;;  %p669_p1 = scmp.ne.s32.totalorder %s667_s10, %s668_s16  ;;  %p673_p11 = scmp.lt.s32.totalorder %s667_s10, %s903_s3 }
  0x37   : > { %p674_p9 = scmp.lt.s32.totalorder %s672_s24, %s668_s16 }
  0x38   : > { %p670_p4 = pnand %p669_p1, %p824_p5 }
  0x39   : > { %p675_p2 = por %p674_p9, %p673_p11 }
  0x3a   : > { %298 = vmatpush.bf16.msra.mxu0 %v485_v2  ;;  %p671_p8 = pneg %p670_p4 }
  0x3c   : > { %p676_p10 = pnand %p675_p2, %p671_p8 }
  0x3e   : > { %299 = vmatpush.bf16.msra.mxu0 %v484_v3 }
  0x42   : > { %300 = vmatpush.bf16.msra.mxu0 %v483_v4 }
  0x46   : > { %301 = vmatpush.bf16.msra.mxu0 %v482_v5 }
  0x4a   : > { %302 = vmatpush.bf16.msra.mxu0 %v481_v6 }
  0x4e   : > { %303 = vmatpush.bf16.msra.mxu0 %v480_v7 }
  0x51   : > { %304 = vmatmul.bf16.vlgmr.msra.gmra.mxu0 %v479_v8 }
  0xce   : > { %v305_v10 = vpop.f32.mrf.mxu0 }
  0xcf   : > { %v312_v11 = vadd.f32 %v310_v9, %v305_v10 }
  0xd1   : > { %314 = vst [vmem:[%s223_s4] sm:$0xff] %v312_v11 }
  0xd6   : > { %v307_v13 = vpop.f32.mrf.mxu0 }
  0xd7   : > { %v313_v14 = vadd.f32 %v311_v12, %v307_v13 }
  0xd9   : > { %315 = vst [vmem:[%s223_s4 + $0x8] sm:$0xff] %v313_v14 }
  0xda   : > { %679 = shalt.err (!%p676_p10)
}
  0xdb   : > { %s730_s20 = smov 128   ;;  %s731_s27 = smov 8  }
  0xdc   : > { %499 = dma.vmem_to_hbm [thread:$0]  (%p824_p5), %s330_s5, 256, %s332_s6, %s317_s9, %s730_s20, %s730_s20, %s731_s27  }
  0xdd PF: > { %s346_s7 = sand.u32 1, %s710_s12   ;;  %p909_p12 = scmp.ge.s32.totalorder %s722_s15, 2 }
  0xde   : > { %s347_s18 = scalar_lea.sflag [#allocation4], %s346_s7 }
  0xdf   : > { %p513_p13 = pnand %p909_p12, %p787_p6 }
  0xe1   : > { %p514_p0 = pneg %p513_p13 }
  0xe3   : > { %705 = dma.done.wait (%p514_p0), %s347_s18, 256  }
  0xe4   : > { %707 = vsyncadd (%p514_p0), %s347_s18, 4294967040  ;;  %p17_p3 = scmp.ge.s32.totalorder %s811_s8, 4   ;;  %s910_s12 = smov %s714_s13 }
  0xe5   : > { %s911_s13 = smov %s718_s14  ;;  %s912_s14 = smov %s820_s11 }
  0xe6   : > { %s913_s15 = smov %s811_s8  ;;  %19 = sbr.rel (!%p17_p3) target bundleno = 6 (0x6), region = 85 }
  0xeb   :  { %353 = vsyncpa [#allocation3], 1 }
  0xec   :  { %355 = vsyncpa [#allocation3 + $0x1], 1 }
  0xed   :  { %356 = vsyncpa [#allocation6], 1 }
  0xee   :  { %357 = vsyncpa [#allocation4], 1 }
  0xef   :  { %359 = vsyncpa [#allocation4 + $0x1], 1 }

</bundles_post_ra>
